<compile_context>
chip_gen: v5e
topology: v5e:2x2
jax: 0.10.0
libtpu: 0.0.40
codegen_flags: <defaults>
</compile_context>

<pallas_src>
import functools
import math

import jax
import jax.numpy as jnp
import numpy as np
from jax.experimental import pallas as pl
from jax.experimental.pallas import tpu as pltpu


def _pe_add_kernel(x_ref, pe_ref, o_ref):
    # x/o tile: (TB, TR, L); pe tile: (TR, L) -> broadcasts over the batch-tile dim.
    o_ref[...] = (x_ref[...] + pe_ref[...]).astype(o_ref.dtype)


@functools.lru_cache(maxsize=32)
def _make_pe(seq_len: int, d_model: int) -> jax.Array:
    """float32 sinusoidal table, identical to the PyTorch buffer rows 0..seq_len-1."""
    pos = np.arange(seq_len, dtype=np.float32)[:, None]                         # (S, 1)
    div = np.exp(
        np.arange(0, d_model, 2, dtype=np.float32) * (-math.log(10000.0) / d_model)
    )                                                                            # (ceil(D/2),)
    ang = pos * div                                                              # (S, ceil(D/2))
    pe = np.zeros((seq_len, d_model), dtype=np.float32)
    pe[:, 0::2] = np.sin(ang)
    pe[:, 1::2] = np.cos(ang[:, : d_model // 2])
    return jnp.asarray(pe)


def _round_up(v: int, m: int) -> int:
    return ((v + m - 1) // m) * m


def _device_kind() -> str:
    try:
        return jax.devices()[0].device_kind.lower()
    except Exception:
        return ""


def _block_budget_bytes(kind: str) -> int:
    """Per-block byte budget, generation dependent."""
    if "v7" in kind:
        return 4 << 20   # ~3.2 TB/s HBM: bigger blocks to amortize ~0.35us/step overhead
    if "v6" in kind:
        return 2 << 20   # 32 MiB default scoped VMEM, ~1.4 TB/s HBM
    return 1 << 20       # v5e and older: 16 MiB default scoped VMEM is the constraint


def _pick_tiles(B, rows, lanes, x_itemsize, o_itemsize, target_bytes, want_two_tiles):
    """Choose (batch_tile, row_tile, n_row_tiles, n_batch_tiles)."""
    # dtype-aware sublane granularity: f32 (8,128), bf16 (16,128), int8/fp8 (32,128)
    sub = 32 // min(x_itemsize, o_itemsize, 4)
    row_bytes = lanes * max(x_itemsize, o_itemsize)

    if rows * row_bytes <= target_bytes:
        tr = rows
    else:
        tr = min(rows, max(sub, (target_bytes // row_bytes) // sub * sub))

    # Grow the block over the batch dim when a full-rows block is still small.
    tb = 1
    if tr == rows:
        tb = int(min(B, max(1, target_bytes // max(1, tr * row_bytes))))

    ns = pl.cdiv(rows, tr)
    nb = pl.cdiv(B, tb)

    # v7x megacore: make sure both TensorCores get at least one tile.
    if want_two_tiles and ns * nb < 2:
        if B >= 2:
            tb = _round_up(B, 2) // 2
            nb = pl.cdiv(B, tb)
        elif rows > sub:
            tr = min(rows, _round_up(pl.cdiv(rows, 2), sub))
            ns = pl.cdiv(rows, tr)

    return int(tb), int(tr), int(ns), int(nb)


def positional_encoding_forward(x: jax.Array, max_len: int = 10000) -> jax.Array:
    """x: [B, S, D]. Returns x + sinusoidal positional encoding (PyTorch semantics)."""
    # Same truncation the PyTorch forward applies when the sequence exceeds max_len.
    if x.shape[1] > max_len:
        x = x[:, :max_len, :]

    B, S, D = x.shape
    pe = _make_pe(S, D)                                   # float32 (S, D), memoized

    # PyTorch adds a float32 buffer: bf16 x promotes to f32 output.
    out_dtype = jnp.result_type(x.dtype, jnp.float32)

    # --- lane-dense layout plumbing (pure reshape/pad; the op is elementwise) ---
    n = S * D
    pad = 0
    if D % 128 == 0:
        rows, lanes = S, D
        x2, pe2 = x, pe
    else:
        padded = _round_up(n, 128)
        pad = padded - n
        rows, lanes = padded // 128, 128
        x_flat = x.reshape(B, n)
        pe_flat = pe.reshape(n)
        if pad:
            x_flat = jnp.pad(x_flat, ((0, 0), (0, pad)))
            pe_flat = jnp.pad(pe_flat, ((0, pad),))
        x2 = x_flat.reshape(B, rows, lanes)
        pe2 = pe_flat.reshape(rows, lanes)

    x_itemsize = int(np.dtype(x.dtype).itemsize)
    o_itemsize = int(np.dtype(out_dtype).itemsize)
    kind = _device_kind()
    target = _block_budget_bytes(kind)
    tb, tr, ns, nb = _pick_tiles(
        B, rows, lanes, x_itemsize, o_itemsize, target, want_two_tiles=("v7" in kind)
    )

    # Double-buffered in/out/pe footprint -> explicit scoped-VMEM limit with headroom,
    # capped at 48 MiB (safe on every generation, incl. v7x's 64 MiB physical VMEM).
    xb = tb * tr * lanes * x_itemsize
    ob = tb * tr * lanes * o_itemsize
    peb = tr * lanes * 4
    need = 2 * (xb + ob + peb)
    vmem_limit = int(min(max(2 * need, 32 << 20), 48 << 20))

    out = pl.pallas_call(
        _pe_add_kernel,
        out_shape=jax.ShapeDtypeStruct((B, rows, lanes), out_dtype),
        grid_spec=pltpu.PrefetchScalarGridSpec(
            num_scalar_prefetch=0,
            # batch innermost: the pe block index is constant across b -> stays resident.
            grid=(ns, nb),
            in_specs=[
                pl.BlockSpec((tb, tr, lanes), lambda s, b: (b, s, 0)),   # x
                pl.BlockSpec((tr, lanes), lambda s, b: (s, 0)),          # pe
            ],
            out_specs=pl.BlockSpec((tb, tr, lanes), lambda s, b: (b, s, 0)),
        ),
        compiler_params=pltpu.CompilerParams(
            dimension_semantics=("parallel", "parallel"),
            vmem_limit_bytes=vmem_limit,
        ),
        cost_estimate=pl.CostEstimate(
            flops=B * rows * lanes,
            transcendentals=0,
            bytes_accessed=B * rows * lanes * (x_itemsize + o_itemsize)
            + rows * lanes * 4,
        ),
    )(x2, pe2)

    if pad:
        out = out.reshape(B, rows * lanes)[:, :n]
    return out.reshape(B, S, D)


def _reference_pe(max_len: int, d_model: int) -> np.ndarray:
    """Pure-numpy replica of the PyTorch __init__ buffer construction."""
    pe = np.zeros((max_len, d_model), dtype=np.float32)
    position = np.arange(0, max_len, dtype=np.float32)[:, None]
    div_term = np.exp(
        np.arange(0, d_model, 2, dtype=np.float32) * (-math.log(10000.0) / d_model)
    )
    pe[:, 0::2] = np.sin(position * div_term)
    pe[:, 1::2] = np.cos(position * div_term)
    return pe[None]  # (1, max_len, d_model)


if __name__ == "__main__":
    B, S, D = 2, 8, 32
    key = jax.random.PRNGKey(0)
    x = jax.random.normal(key, (B, S, D), dtype=jnp.float32)

    out = positional_encoding_forward(x, max_len=10000)
    out = jax.block_until_ready(out)

    # Correctness check vs. PyTorch-equivalent reference
    ref = np.asarray(x) + _reference_pe(10000, D)[:, :S, :]
    assert out.dtype == jnp.float32 and out.shape == (B, S, D)
    np.testing.assert_allclose(np.asarray(out), ref, rtol=1e-5, atol=1e-5)

    print("KERNEL_OK")
</pallas_src>

<mosaic_0001>
module attributes {stable_mosaic.version = 11 : i64} {
  func.func @_pe_add_kernel(%arg0: i32, %arg1: i32, %arg2: memref<2x2x128xf32, #tpu.memory_space<vmem>>, %arg3: memref<2x128xf32, #tpu.memory_space<vmem>>, %arg4: memref<2x2x128xf32, #tpu.memory_space<vmem>>) attributes {dimension_semantics = [#tpu.dimension_semantics<parallel>, #tpu.dimension_semantics<parallel>], iteration_bounds = array<i64: 1, 1>, scalar_prefetch = 0 : i64, scratch_operands = 0 : i64, tpu.core_type = #tpu.core_type<tc>, window_params = [{transform_indices = @transform_0, window_bounds = array<i64: 2, 2, 128>}, {transform_indices = @transform_1, window_bounds = array<i64: 2, 128>}, {transform_indices = @transform_2, window_bounds = array<i64: 2, 2, 128>}]} {
    %c0 = arith.constant 0 : index
    %c0_0 = arith.constant 0 : index
    %c0_1 = arith.constant 0 : index
    %0 = vector.load %arg2[%c0, %c0_0, %c0_1] : memref<2x2x128xf32, #tpu.memory_space<vmem>>, vector<2x2x128xf32>
    %c0_2 = arith.constant 0 : index
    %c0_3 = arith.constant 0 : index
    %1 = vector.load %arg3[%c0_2, %c0_3] : memref<2x128xf32, #tpu.memory_space<vmem>>, vector<2x128xf32>
    %2 = vector.shape_cast %1 : vector<2x128xf32> to vector<1x2x128xf32>
    %3 = vector.broadcast %2 : vector<1x2x128xf32> to vector<2x2x128xf32>
    %4 = arith.addf %0, %3 : vector<2x2x128xf32>
    %c0_4 = arith.constant 0 : index
    %c0_5 = arith.constant 0 : index
    %c0_6 = arith.constant 0 : index
    %5 = vector.load %arg4[%c0_4, %c0_5, %c0_6] : memref<2x2x128xf32, #tpu.memory_space<vmem>>, vector<2x2x128xf32>
    tpu.vector_store %arg4[%c0_4, %c0_5, %c0_6], %4 {strides = array<i32>} : memref<2x2x128xf32, #tpu.memory_space<vmem>>, vector<2x2x128xf32>,
    return
  }
  func.func @transform_0(%arg0: i32, %arg1: i32) -> (i32, i32, i32) {
    %c0_i32 = arith.constant 0 : i32
    %c0_i32_0 = arith.constant 0 : i32
    return %arg1, %arg0, %c0_i32 : i32, i32, i32
  }
  func.func @transform_1(%arg0: i32, %arg1: i32) -> (i32, i32) {
    %c0_i32 = arith.constant 0 : i32
    %c0_i32_0 = arith.constant 0 : i32
    return %arg0, %c0_i32 : i32, i32
  }
  func.func @transform_2(%arg0: i32, %arg1: i32) -> (i32, i32, i32) {
    %c0_i32 = arith.constant 0 : i32
    %c0_i32_0 = arith.constant 0 : i32
    return %arg1, %arg0, %c0_i32 : i32, i32, i32
  }
}

</mosaic_0001>

<bundles_post_ra>
// kernel: tpu_custom_call.1
= control target key start
LH: loop header
LB: loop body
LE: loop exit
PB: predicated region body
PF: predicated region fallthrough
CT: control target
= control target key end

     0   :  { %7 = vsyncpa [#allocation3], 0  ;;  %s181_s0 = inlined_call_operand.hbm [shape: f32[2,2,128], index: 0, kind: input, shape index: {}]   ;;  %s182_s1 = inlined_call_operand.hbm [shape: f32[2,128], index: 1, kind: input, shape index: {}]   ;;  %s183_s2 = inlined_call_operand.hbm [shape: f32[2,2,128], index: 2, kind: output, shape index: {}]  }
   0x1   :  { %8 = vsyncpa [#allocation6], 0 }
   0x2   :  { %9 = vsyncpa [#allocation4], 0  ;;  %s14_s11 = sshll.u32 %s181_s0, 4  ;;  %s152_s12 = smov [#allocation2]   ;;  %s15_s11 = int_to_ptr.hbm [resolvable:$true] %s14_s11 }
   0x3   :  { %s16_s13 = sshll.u32 %s152_s12, 4  ;;  %s28_s16 = sshll.u32 %s182_s1, 4  ;;  %s17_s13 = int_to_ptr.vmem [resolvable:$true] %s16_s13  ;;  %s29_s16 = int_to_ptr.hbm [resolvable:$true] %s28_s16 }
   0x4   :  { %s153_s17 = smov 32   ;;  %s154_s18 = smov 2  }
   0x5   :  { %22 = dma.hbm_to_vmem [thread:$0]  %s15_s11, 64, %s17_s13, [#allocation3], %s153_s17, %s153_s17, %s154_s18  }
   0x6   :  { %s155_s19 = smov [#allocation5]  }
   0x7   :  { %s30_s20 = sshll.u32 %s155_s19, 4  ;;  %s31_s20 = int_to_ptr.vmem [resolvable:$true] %s30_s20 }
   0x8   :  { %33 = dma.hbm_to_vmem [thread:$0]  %s29_s16, 32, %s31_s20, [#allocation6]  }
   0x9   :  { %146 = dma.done.wait [#allocation3], 64  }
   0xa   :  { %147 = vsyncadd [#allocation3], 4294967232 }
   0xb   :  { %148 = dma.done.wait [#allocation6], 32  }
   0xc   :  { %149 = vsyncadd [#allocation6], 4294967264  ;;  %s156_s0 = smov [#allocation7]   ;;  %s55_s24 = sshll.u32 %s183_s2, 4  ;;  %v42_v0 = vld [vmem:[#allocation2] sm:$0x3]  ;;  %s56_s24 = int_to_ptr.hbm [resolvable:$true] %s55_s24 }
   0xd   :  { %s53_s21 = sshll.u32 %s156_s0, 4  ;;  %v44_v1 = vld [vmem:[#allocation5] sm:$0x3]  ;;  %v43_v2 = vld [vmem:[#allocation2 + $0x2] sm:$0x3]  ;;  %s54_s21 = int_to_ptr.vmem [resolvable:$true] %s53_s21 }
   0xe   :  { %v45_v3 = vadd.f32 %v44_v1, %v42_v0  ;;  %v46_v4 = vadd.f32 %v44_v1, %v43_v2 }
  0x10   :  { %47 = vst [vmem:[#allocation7] sm:$0x3] %v45_v3 }
  0x11   :  { %48 = vst [vmem:[#allocation7 + $0x2] sm:$0x3] %v46_v4 }
  0x12   :  { %61 = dma.vmem_to_hbm [thread:$0]  %s54_s21, 64, %s56_s24, [#allocation4], %s153_s17, %s153_s17, %s154_s18  }
  0x13   :  { %150 = dma.done.wait [#allocation4], 64  }
  0x14   :  { %151 = vsyncadd [#allocation4], 4294967232 }
  0x15   :  { %66 = vsyncpa [#allocation3], 1 }
  0x16   :  { %67 = vsyncpa [#allocation6], 1 }
  0x17   :  { %68 = vsyncpa [#allocation4], 1 }

</bundles_post_ra>
